<compile_context>
chip_gen: v7x
topology: tpu7x:2x2x1
jax: 0.10.0
libtpu: 0.0.40
codegen_flags: <defaults>
</compile_context>

<pallas_src>
import jax
import jax.numpy as jnp
from jax.experimental import pallas as pl
from jax.experimental.pallas import tpu as pltpu

IN_F = 63        # landmark features (21 keypoints * xyz)
H1 = 128
H2 = 64
OUT_F = 29

TM_MAX = 4096    # rows per batch tile; working set ~20 MiB, fits all gens
MIN_GRID = 2     # v7x has 2 TensorCores: prefer >=2 parallel batch tiles


def _round_up(n, m):
    return ((n + m - 1) // m) * m


def _choose_tm(batch):
    """Pick a batch-tile size: large (amortize per-step overhead), multiple of
    16 (bf16/f32 sublane friendly), and leaving >=MIN_GRID grid steps when the
    batch is big enough (v7x dual-TC sharding)."""
    if batch <= 16:
        return batch                      # block dim == full array dim: always legal
    target = max(pl.cdiv(batch, MIN_GRID), 16)
    tm = min(TM_MAX, _round_up(target, 16))
    if tm >= batch:
        return batch
    return tm


def _asl_mlp_kernel(x_ref, w1_ref, b1_ref, w2_ref, b2_ref, w3_ref, b3_ref, o_ref):
    # x tile arrives as raw f32 (TM, 63); cast to bf16 in-register (VPU).
    x = x_ref[...].astype(jnp.bfloat16)                               # (TM, 63)

    # fc1 + ReLU (MXU matmul, f32 accumulate)
    h1 = jnp.dot(x, w1_ref[...], preferred_element_type=jnp.float32) + b1_ref[...]
    h1 = jnp.maximum(h1, 0.0).astype(jnp.bfloat16)                    # (TM, 128)
    # TODO(synk): dropout(p=0.2) is identity at inference; no RNG mask applied.

    # fc2 + ReLU
    h2 = jnp.dot(h1, w2_ref[...], preferred_element_type=jnp.float32) + b2_ref[...]
    h2 = jnp.maximum(h2, 0.0).astype(jnp.bfloat16)                    # (TM, 64)

    # fc3 (no activation in the reference forward)
    out = jnp.dot(h2, w3_ref[...], preferred_element_type=jnp.float32) + b3_ref[...]
    o_ref[...] = out.astype(o_ref.dtype)                              # (TM, 29) bf16


def prepare_params(params):
    """One-time parameter prep (hoisted out of the per-call path): bf16 weights
    (stored (in, out) so the kernel does x @ W), f32 (1, N) biases."""
    return dict(
        w1=params["w1"].astype(jnp.bfloat16),
        b1=params["b1"].reshape(1, H1).astype(jnp.float32),
        w2=params["w2"].astype(jnp.bfloat16),
        b2=params["b2"].reshape(1, H2).astype(jnp.float32),
        w3=params["w3"].astype(jnp.bfloat16),
        b3=params["b3"].reshape(1, OUT_F).astype(jnp.float32),
    )


def asl_translator_forward(x, prepped):
    """x: (B, 63) float32.  prepped: output of prepare_params.
    Returns (B, 29) bfloat16 logits."""
    batch = x.shape[0]
    tm = _choose_tm(batch)
    grid_m = pl.cdiv(batch, tm)

    # Input tile spec: raw f32, full 63-wide rows (last dim == array dim is
    # legal).  Deepen the pipeline only when the grid is deep enough.
    if grid_m >= 3:
        x_spec = pl.BlockSpec((tm, IN_F), lambda i: (i, 0),
                              pipeline_mode=pl.Buffered(3))
    else:
        x_spec = pl.BlockSpec((tm, IN_F), lambda i: (i, 0))

    # Weights/biases: constant index_map -> stay VMEM-resident across steps.
    const = lambda shape: pl.BlockSpec(shape, lambda i: (0, 0))

    weight_bytes = (IN_F * H1 + H1 * H2 + H2 * OUT_F) * 2 + (H1 + H2 + OUT_F) * 4
    cost = pl.CostEstimate(
        flops=2 * batch * (IN_F * H1 + H1 * H2 + H2 * OUT_F),
        transcendentals=0,
        bytes_accessed=batch * IN_F * 4 + batch * OUT_F * 2 + weight_bytes,
    )

    out = pl.pallas_call(
        _asl_mlp_kernel,
        out_shape=jax.ShapeDtypeStruct((batch, OUT_F), jnp.bfloat16),
        grid=(grid_m,),
        in_specs=[
            x_spec,
            const((IN_F, H1)), const((1, H1)),
            const((H1, H2)), const((1, H2)),
            const((H2, OUT_F)), const((1, OUT_F)),
        ],
        out_specs=pl.BlockSpec((tm, OUT_F), lambda i: (i, 0)),
        compiler_params=pltpu.CompilerParams(
            dimension_semantics=("parallel",),       # v7x: shard tiles over 2 TCs
            vmem_limit_bytes=48 * 1024 * 1024,       # big tiles OK on v5e too
        ),
        cost_estimate=cost,
    )(x, prepped["w1"], prepped["b1"], prepped["w2"], prepped["b2"],
      prepped["w3"], prepped["b3"])

    return out


def init_params(key):
    """Deterministic synthetic parameters matching the nn.Linear shapes,
    stored transposed to (in, out)."""
    ks = jax.random.split(key, 6)

    def linear(kw, kb, fan_in, fan_out):
        bound = 1.0 / jnp.sqrt(jnp.float32(fan_in))
        w = jax.random.uniform(kw, (fan_in, fan_out), jnp.float32, -bound, bound)
        b = jax.random.uniform(kb, (1, fan_out), jnp.float32, -bound, bound)
        return w, b

    w1, b1 = linear(ks[0], ks[1], IN_F, H1)
    w2, b2 = linear(ks[2], ks[3], H1, H2)
    w3, b3 = linear(ks[4], ks[5], H2, OUT_F)
    return dict(w1=w1, b1=b1, w2=w2, b2=b2, w3=w3, b3=b3)


def reference_forward(x, p):
    # Same bf16-weight / f32-accumulate numerics as the kernel (kept in f32
    # at the end; kernel additionally rounds the logits to bf16).
    xb = x.astype(jnp.bfloat16)
    w1 = p["w1"].astype(jnp.bfloat16)
    w2 = p["w2"].astype(jnp.bfloat16)
    w3 = p["w3"].astype(jnp.bfloat16)
    h1 = jnp.maximum(
        jnp.dot(xb, w1, preferred_element_type=jnp.float32) + p["b1"], 0.0
    ).astype(jnp.bfloat16)
    h2 = jnp.maximum(
        jnp.dot(h1, w2, preferred_element_type=jnp.float32) + p["b2"], 0.0
    ).astype(jnp.bfloat16)
    return jnp.dot(h2, w3, preferred_element_type=jnp.float32) + p["b3"]


if __name__ == "__main__":
    key = jax.random.PRNGKey(0)
    k_params, k_x = jax.random.split(key)

    params = init_params(k_params)
    prepped = prepare_params(params)

    # Small batch of 63-dim landmark vectors (21 hand keypoints * xyz).
    x = jax.random.normal(k_x, (8, IN_F), jnp.float32)

    out = jax.jit(asl_translator_forward)(x, prepped)
    out = jax.block_until_ready(out)

    ref = reference_forward(x, params)
    assert out.shape == (8, OUT_F), out.shape
    assert out.dtype == jnp.bfloat16, out.dtype
    out_f32 = out.astype(jnp.float32)
    assert jnp.allclose(out_f32, ref, atol=3e-2, rtol=3e-2), "mismatch vs reference"
    assert bool(jnp.all(jnp.isfinite(out_f32))), "non-finite output"

    print("KERNEL_OK")
</pallas_src>

<mosaic_0001>
module attributes {stable_mosaic.version = 11 : i64} {
  func.func @_asl_mlp_kernel(%arg0: i32, %arg1: memref<8x63xf32, #tpu.memory_space<vmem>>, %arg2: memref<63x128xbf16, #tpu.memory_space<vmem>>, %arg3: memref<1x128xf32, #tpu.memory_space<vmem>>, %arg4: memref<128x64xbf16, #tpu.memory_space<vmem>>, %arg5: memref<1x64xf32, #tpu.memory_space<vmem>>, %arg6: memref<64x29xbf16, #tpu.memory_space<vmem>>, %arg7: memref<1x29xf32, #tpu.memory_space<vmem>>, %arg8: memref<8x29xbf16, #tpu.memory_space<vmem>>) attributes {dimension_semantics = [#tpu.dimension_semantics<parallel>], iteration_bounds = array<i64: 1>, scalar_prefetch = 0 : i64, scratch_operands = 0 : i64, tpu.core_type = #tpu.core_type<tc>, window_params = [{transform_indices = @transform_0, window_bounds = array<i64: 8, 63>}, {pipeline_mode = #tpu.pipeline_mode<synchronous>, transform_indices = @transform_1, window_bounds = array<i64: 63, 128>}, {pipeline_mode = #tpu.pipeline_mode<synchronous>, transform_indices = @transform_2, window_bounds = array<i64: 1, 128>}, {pipeline_mode = #tpu.pipeline_mode<synchronous>, transform_indices = @transform_3, window_bounds = array<i64: 128, 64>}, {pipeline_mode = #tpu.pipeline_mode<synchronous>, transform_indices = @transform_4, window_bounds = array<i64: 1, 64>}, {pipeline_mode = #tpu.pipeline_mode<synchronous>, transform_indices = @transform_5, window_bounds = array<i64: 64, 29>}, {pipeline_mode = #tpu.pipeline_mode<synchronous>, transform_indices = @transform_6, window_bounds = array<i64: 1, 29>}, {transform_indices = @transform_7, window_bounds = array<i64: 8, 29>}]} {
    %c0 = arith.constant 0 : index
    %c0_0 = arith.constant 0 : index
    %0 = vector.load %arg1[%c0, %c0_0] : memref<8x63xf32, #tpu.memory_space<vmem>>, vector<8x63xf32>
    %1 = arith.truncf %0 : vector<8x63xf32> to vector<8x63xbf16>
    %c0_1 = arith.constant 0 : index
    %c0_2 = arith.constant 0 : index
    %2 = vector.load %arg2[%c0_1, %c0_2] : memref<63x128xbf16, #tpu.memory_space<vmem>>, vector<63x128xbf16>
    %cst = arith.constant dense<0.000000e+00> : vector<8x128xf32>
    %3 = tpu.matmul %1, %2, %cst {dimension_numbers = #tpu.dot_dimension_numbers<[1], [0], [0], [1], [0, 0, 1, 1], [], []>} : vector<8x63xbf16>, vector<63x128xbf16>, vector<8x128xf32> -> vector<8x128xf32>
    %c0_3 = arith.constant 0 : index
    %c0_4 = arith.constant 0 : index
    %4 = vector.load %arg3[%c0_3, %c0_4] : memref<1x128xf32, #tpu.memory_space<vmem>>, vector<1x128xf32>
    %5 = vector.broadcast %4 : vector<1x128xf32> to vector<8x128xf32>
    %6 = arith.addf %3, %5 : vector<8x128xf32>
    %cst_5 = arith.constant 0.000000e+00 : f32
    %7 = vector.broadcast %cst_5 : f32 to vector<8x128xf32>
    %8 = arith.maximumf %6, %7 : vector<8x128xf32>
    %9 = arith.truncf %8 : vector<8x128xf32> to vector<8x128xbf16>
    %c0_6 = arith.constant 0 : index
    %c0_7 = arith.constant 0 : index
    %10 = vector.load %arg4[%c0_6, %c0_7] : memref<128x64xbf16, #tpu.memory_space<vmem>>, vector<128x64xbf16>
    %cst_8 = arith.constant dense<0.000000e+00> : vector<8x64xf32>
    %11 = tpu.matmul %9, %10, %cst_8 {dimension_numbers = #tpu.dot_dimension_numbers<[1], [0], [0], [1], [0, 0, 1, 1], [], []>} : vector<8x128xbf16>, vector<128x64xbf16>, vector<8x64xf32> -> vector<8x64xf32>
    %c0_9 = arith.constant 0 : index
    %c0_10 = arith.constant 0 : index
    %12 = vector.load %arg5[%c0_9, %c0_10] : memref<1x64xf32, #tpu.memory_space<vmem>>, vector<1x64xf32>
    %13 = vector.broadcast %12 : vector<1x64xf32> to vector<8x64xf32>
    %14 = arith.addf %11, %13 : vector<8x64xf32>
    %cst_11 = arith.constant 0.000000e+00 : f32
    %15 = vector.broadcast %cst_11 : f32 to vector<8x64xf32>
    %16 = arith.maximumf %14, %15 : vector<8x64xf32>
    %17 = arith.truncf %16 : vector<8x64xf32> to vector<8x64xbf16>
    %c0_12 = arith.constant 0 : index
    %c0_13 = arith.constant 0 : index
    %18 = vector.load %arg6[%c0_12, %c0_13] : memref<64x29xbf16, #tpu.memory_space<vmem>>, vector<64x29xbf16>
    %cst_14 = arith.constant dense<0.000000e+00> : vector<8x29xf32>
    %19 = tpu.matmul %17, %18, %cst_14 {dimension_numbers = #tpu.dot_dimension_numbers<[1], [0], [0], [1], [0, 0, 1, 1], [], []>} : vector<8x64xbf16>, vector<64x29xbf16>, vector<8x29xf32> -> vector<8x29xf32>
    %c0_15 = arith.constant 0 : index
    %c0_16 = arith.constant 0 : index
    %20 = vector.load %arg7[%c0_15, %c0_16] : memref<1x29xf32, #tpu.memory_space<vmem>>, vector<1x29xf32>
    %21 = vector.broadcast %20 : vector<1x29xf32> to vector<8x29xf32>
    %22 = arith.addf %19, %21 : vector<8x29xf32>
    %23 = arith.truncf %22 : vector<8x29xf32> to vector<8x29xbf16>
    %c0_17 = arith.constant 0 : index
    %c0_18 = arith.constant 0 : index
    %24 = vector.load %arg8[%c0_17, %c0_18] : memref<8x29xbf16, #tpu.memory_space<vmem>>, vector<8x29xbf16>
    tpu.vector_store %arg8[%c0_17, %c0_18], %23 {strides = array<i32>} : memref<8x29xbf16, #tpu.memory_space<vmem>>, vector<8x29xbf16>,
    return
  }
  func.func @transform_0(%arg0: i32) -> (i32, i32) {
    %c0_i32 = arith.constant 0 : i32
    %c0_i32_0 = arith.constant 0 : i32
    return %arg0, %c0_i32 : i32, i32
  }
  func.func @transform_1(%arg0: i32) -> (i32, i32) {
    %c0_i32 = arith.constant 0 : i32
    %c0_i32_0 = arith.constant 0 : i32
    %c0_i32_1 = arith.constant 0 : i32
    return %c0_i32, %c0_i32_0 : i32, i32
  }
  func.func @transform_2(%arg0: i32) -> (i32, i32) {
    %c0_i32 = arith.constant 0 : i32
    %c0_i32_0 = arith.constant 0 : i32
    %c0_i32_1 = arith.constant 0 : i32
    return %c0_i32, %c0_i32_0 : i32, i32
  }
  func.func @transform_3(%arg0: i32) -> (i32, i32) {
    %c0_i32 = arith.constant 0 : i32
    %c0_i32_0 = arith.constant 0 : i32
    %c0_i32_1 = arith.constant 0 : i32
    return %c0_i32, %c0_i32_0 : i32, i32
  }
  func.func @transform_4(%arg0: i32) -> (i32, i32) {
    %c0_i32 = arith.constant 0 : i32
    %c0_i32_0 = arith.constant 0 : i32
    %c0_i32_1 = arith.constant 0 : i32
    return %c0_i32, %c0_i32_0 : i32, i32
  }
  func.func @transform_5(%arg0: i32) -> (i32, i32) {
    %c0_i32 = arith.constant 0 : i32
    %c0_i32_0 = arith.constant 0 : i32
    %c0_i32_1 = arith.constant 0 : i32
    return %c0_i32, %c0_i32_0 : i32, i32
  }
  func.func @transform_6(%arg0: i32) -> (i32, i32) {
    %c0_i32 = arith.constant 0 : i32
    %c0_i32_0 = arith.constant 0 : i32
    %c0_i32_1 = arith.constant 0 : i32
    return %c0_i32, %c0_i32_0 : i32, i32
  }
  func.func @transform_7(%arg0: i32) -> (i32, i32) {
    %c0_i32 = arith.constant 0 : i32
    %c0_i32_0 = arith.constant 0 : i32
    return %arg0, %c0_i32 : i32, i32
  }
}

</mosaic_0001>

<bundles_post_ra>
// kernel: asl_translator_forward.1
= control target key start
LH: loop header
LB: loop body
LE: loop exit
PB: predicated region body
PF: predicated region fallthrough
CT: control target
= control target key end

     0   :  { %v462_v1 = vmov 0.0   ;;  %vm72_vm0 = vcmask 1046528   ;;  %vm73_vm1 = vcmask 1047552   ;;  %v463_v4 = vmov 65535   ;;  %s600_s0 = inlined_call_operand.vmem [shape: f32[8,63], index: 0, kind: input, shape index: {}]   ;;  %s601_s1 = inlined_call_operand.vmem [shape: bf16[63,128], index: 1, kind: input, shape index: {}]   ;;  %s602_s2 = inlined_call_operand.vmem [shape: f32[1,128], index: 2, kind: input, shape index: {}]   ;;  %s603_s3 = inlined_call_operand.vmem [shape: bf16[128,64], index: 3, kind: input, shape index: {}]   ;;  %s604_s4 = inlined_call_operand.vmem [shape: f32[1,64], index: 4, kind: input, shape index: {}]   ;;  %s605_s5 = inlined_call_operand.vmem [shape: bf16[64,29], index: 5, kind: input, shape index: {}]   ;;  %s606_s6 = inlined_call_operand.vmem [shape: f32[1,29], index: 6, kind: input, shape index: {}]   ;;  %s607_s7 = inlined_call_operand.hbm [shape: bf16[8,29], index: 7, kind: output, shape index: {}]  }
   0x1   :  { %v422_v0 = vld [vmem:[%s601_s1] sm:$0xff]   ;;  %374 = vmatprep.subr.bf16.mxu0 %v462_v1  ;;  %386 = vmatprep.subr.bf16.mxu1 %v462_v1  ;;  %v423_v2 = vld [vmem:[%s601_s1 + $0x8] sm:$0xff]   ;;  %v424_v3 = vld [vmem:[%s601_s1 + $0x10] sm:$0xff]   ;;  %v74_v5 = vsel %vm72_vm0, 4294967295, %v463_v4  ;;  %vm464_vm2 = vmmov 0   ;;  %vm68_vm3 = vcmask 515072  }
   0x2   :  { %375 = vmatpush3.bf16.msra.mxu0 %v422_v0  ;;  %382 = vmatprep.mubr.msk.bf16.mxu0 %vm464_vm2, %v462_v1  ;;  %v426_v6 = vld [vmem:[%s603_s3] sm:$0xff]   ;;  %v425_v7 = vld [vmem:[%s601_s1 + $0x18] sm:$0xff]   ;;  %v75_v8 = vsel %vm73_vm1, %v74_v5, 0  ;;  %v427_v9 = vld [vmem:[%s603_s3 + $0x8] sm:$0xff]  }
   0x3   :  { %376 = vmatprep.subr.bf16.mxu0 %v462_v1  ;;  %402 = vmatprep.mubr.msk.bf16.mxu1 %vm464_vm2, %v462_v1  ;;  %v77_v10 = vand.u32 %v425_v7, %v75_v8  ;;  %v28_v11 = vld [vmem:[%s600_s0] sm:$0xff]  ;;  %v428_v12 = vld [vmem:[%s603_s3 + $0x10] sm:$0xff]   ;;  %v429_v14 = vld [vmem:[%s603_s3 + $0x18] sm:$0xff]  }
   0x4   :  { %387 = vmatpush3.bf16.msra.mxu1 %v426_v6  ;;  %v29_v13 = vpack.c.bf16 %v28_v11, %v28_v11 }
   0x5   :  { %388 = vmatprep.subr.bf16.mxu1 %v462_v1 }
   0x6   :  { %377 = vmatpush3.bf16.msra.mxu0 %v423_v2 }
   0x7   :  { %378 = vmatprep.subr.bf16.mxu0 %v462_v1 }
   0x8   :  { %389 = vmatpush3.bf16.msra.mxu1 %v427_v9 }
   0x9   :  { %390 = vmatprep.subr.bf16.mxu1 %v462_v1 }
   0xa   :  { %379 = vmatpush3.bf16.msra.mxu0 %v424_v3 }
   0xb   :  { %380 = vmatprep.subr.bf16.mxu0 %v462_v1 }
   0xc   :  { %391 = vmatpush3.bf16.msra.mxu1 %v428_v12 }
   0xe   :  { %381 = vmatpush3.bf16.msra.mxu0 %v77_v10 }
   0xf   :  { %406 = vmatprep.subr.bf16.mxu0 %v462_v1 }
  0x10   :  { %12 = vsyncpa [#allocation3], 0  ;;  %392 = vmatprep.subr.bf16.mxu1 %v462_v1  ;;  %v430_v15 = vld [vmem:[%s603_s3 + $0x20] sm:$0xff]   ;;  %v431_v16 = vld [vmem:[%s603_s3 + $0x28] sm:$0xff]   ;;  %vm273_vm4 = vcmask 523264   ;;  %vm318_vm5 = vcmask 232448  }
  0x11   :  { %383 = vmatmul.mubr.msk.bf16.vlgmr.msra.gmra.mrb[0].mxu0 %vm68_vm3, %v29_v13  ;;  %393 = vmatpush3.bf16.msra.mxu1 %v429_v14  ;;  %v432_v17 = vld [vmem:[%s603_s3 + $0x30] sm:$0xff]   ;;  %v433_v18 = vld [vmem:[%s603_s3 + $0x38] sm:$0xff]   ;;  %v434_v19 = vld [vmem:[%s605_s5] sm:$0xff]  }
  0x12   :  { %414 = vmatprep.mubr.msk.bf16.mxu0 %vm464_vm2, %v462_v1  ;;  %394 = vmatprep.subr.bf16.mxu1 %v462_v1  ;;  %v435_v20 = vld [vmem:[%s605_s5 + $0x8] sm:$0xff]   ;;  %v334_v21 = vld [vmem:[%s602_s2] ss:$0 sm:$0xff]  ;;  %v436_v29 = vld [vmem:[%s605_s5 + $0x10] sm:$0xff]  }
  0x13   :  { %407 = vmatpush3.bf16.msra.mxu0 %v434_v19  ;;  %v437_v30 = vld [vmem:[%s605_s5 + $0x18] sm:$0xff]   ;;  %v340_v31 = vld [vmem:[%s604_s4] ss:$0 sm:$0xff]  ;;  %s465_s5 = smov [#allocation2]  }
  0x14   :  { %408 = vmatprep.subr.bf16.mxu0 %v462_v1  ;;  %v349_v39 = vld [vmem:[%s606_s6] ss:$0 sm:$0xff]  ;;  %s326_s14 = sshll.u32 %s465_s5, 4  ;;  %s327_s14 = int_to_ptr.vmem [resolvable:$true] %s326_s14 }
  0x15   :  { %395 = vmatpush3.bf16.msra.mxu1 %v430_v15  ;;  %s438_s4 = scalar_lea.vmem %s327_s14, 64  ;;  %p443_p1 = scmp.lt.s32.totalorder %s327_s14, %s327_s14 }
  0x16   :  { %396 = vmatprep.subr.bf16.mxu1 %v462_v1  ;;  %p439_p0 = scmp.ne.s32.totalorder %s327_s14, %s438_s4  ;;  %p444_p2 = scmp.lt.s32.totalorder %s438_s4, %s438_s4 }
  0x17   :  { %409 = vmatpush3.bf16.msra.mxu0 %v435_v20 }
  0x18   :  { %410 = vmatprep.subr.bf16.mxu0 %v462_v1  ;;  %p445_p3 = por %p444_p2, %p443_p1 }
  0x19   :  { %397 = vmatpush3.bf16.msra.mxu1 %v431_v16 }
  0x1a   :  { %398 = vmatprep.subr.bf16.mxu1 %v462_v1  ;;  %p446_p4 = pnand %p445_p3, %p439_p0 }
  0x1b   :  { %411 = vmatpush3.bf16.msra.mxu0 %v436_v29 }
  0x1c   :  { %412 = vmatprep.subr.bf16.mxu0 %v462_v1 }
  0x1d   :  { %399 = vmatpush3.bf16.msra.mxu1 %v432_v17 }
  0x1e   :  { %400 = vmatprep.subr.bf16.mxu1 %v462_v1 }
  0x1f   :  { %413 = vmatpush3.bf16.msra.mxu0 %v437_v30 }
  0x21   :  { %401 = vmatpush3.bf16.msra.mxu1 %v433_v18 }
  0xe4   :  { %v113_v22 = vpop.f32.mrb[0].mxu0 }
  0xe5   :  { %v114_v23 = vadd.f32 %v334_v21, %v113_v22  ;;  %v384_v24 = vpop.f32.mrb[1].mxu0 }
  0xe6   :  { %v116_v25 = vpop.f32.mrb[2].mxu0 }
  0xe7   :  { %v119_v26 = vmax.f32 %v114_v23, 0.0  ;;  %v385_v27 = vpop.f32.mrb[3].mxu0 }
  0xe9   :  { %v120_v28 = vpack.c.bf16 %v119_v26, %v119_v26 }
  0xeb   :  { %403 = vmatmul.mubr.bf16.vlgmr.msra.gmra.mrb[0].mxu1 %v120_v28 }
 0x1be   :  { %v226_v32 = vpop.f32.mrb[0].mxu1 }
 0x1bf   :  { %v227_v33 = vadd.f32 %v340_v31, %v226_v32  ;;  %v404_v34 = vpop.f32.mrb[1].mxu1 }
 0x1c0   :  { %v229_v35 = vpop.f32.mrb[2].mxu1 }
 0x1c1   :  { %v232_v36 = vmax.f32 %v227_v33, 0.0  ;;  %v405_v37 = vpop.f32.mrb[3].mxu1 }
 0x1c3   :  { %v233_v38 = vpack.c.bf16 %v232_v36, %v232_v36 }
 0x1c5   :  { %415 = vmatmul.mubr.msk.bf16.vlgmr.msra.gmra.mrb[4].mxu0 %vm273_vm4, %v233_v38 }
 0x298   :  { %v311_v40 = vpop.f32.mrb[4].mxu0 }
 0x299   :  { %v312_v41 = vadd.f32 %v349_v39, %v311_v40  ;;  %v416_v42 = vpop.f32.mrb[5].mxu0 }
 0x29a   :  { %v314_v43 = vpop.f32.mrb[6].mxu0 }
 0x29b   :  { %v317_v44 = vpack.c.bf16 %v312_v41, %v312_v41  ;;  %v417_v45 = vpop.f32.mrb[7].mxu0 }
 0x29d   :  { %319 = vst.msk [vmem:[#allocation2] sm:$0xf] %vm318_vm5, %v317_v44 }
 0x29e   :  { %449 = shalt.err (!%p446_p4)
}
 0x29f   :  { %s450_s16 = scalar_lea.hbm %s607_s7, 64 }
 0x2a0   :  { %p451_p5 = scmp.ne.s32.totalorder %s607_s7, %s450_s16  ;;  %p454_p6 = scmp.lt.u32.totalorder %s450_s16, %s607_s7 }
 0x2a2   :  { %p456_p7 = pnand %p454_p6, %p451_p5 }
 0x2a4   :  { %459 = shalt.err (!%p456_p7)
}
 0x2a5   :  { %329 = dma.vmem_to_hbm [thread:$0]  %s327_s14, 64, %s607_s7, [#allocation3]  }
 0x2a6   :  { %460 = dma.done.wait [#allocation3], 64  }
 0x2a7   :  { %461 = vsyncadd [#allocation3], 4294967232 }
 0x2a8   :  { %333 = vsyncpa [#allocation3], 1 }

</bundles_post_ra>
